<compile_context>
chip_gen: v7x
topology: tpu7x:2x2x1
jax: 0.10.0
libtpu: 0.0.40
codegen_flags: <defaults>
</compile_context>

<pallas_src>
import functools
import math

import jax
import jax.numpy as jnp
from jax.experimental import pallas as pl
from jax.experimental.pallas import tpu as pltpu

_LANE = 128
_ROW_ALIGN = 16          # covers bf16 sublane packing (and f32's 8)
_SQRT_HALF = 0.7071067811865476


def _round_up(x, m):
    return ((x + m - 1) // m) * m


def _pad2d(a, rows, cols):
    pr, pc = rows - a.shape[0], cols - a.shape[1]
    if pr or pc:
        a = jnp.pad(a, ((0, pr), (0, pc)))
    return a


def _gelu(h, approximate):
    if approximate:
        # tanh approximation -> EUP slot, essentially free under MXU work.
        return jax.nn.gelu(h, approximate=True)
    # Exact erf-based GELU: matches torch.nn.GELU() default.
    return 0.5 * h * (1.0 + jax.lax.erf(h * _SQRT_HALF))


def _vmem_capacity_bytes():
    try:
        return int(pltpu.get_tpu_info().vmem_capacity_bytes)
    except Exception:
        return 64 * 1024 * 1024   # conservative fallback (v7x per-TensorCore VMEM)


# --------------------------------------------------------------------------- #
# Kernels
# --------------------------------------------------------------------------- #
def _mlp_resident_kernel(x_ref, w_fc_ref, w_proj_ref, o_ref, *,
                         approximate_gelu, precision):
    # x_ref:      (TM, E_pad)       activation row tile (compute dtype)
    # w_fc_ref:   (E_pad, H_pad)    c_fc weight, (in, out) layout, VMEM-resident
    # w_proj_ref: (H_pad, E_pad)    c_proj weight, (in, out) layout, VMEM-resident
    # o_ref:      (TM, E_pad)
    h = jnp.dot(x_ref[...], w_fc_ref[...],
                preferred_element_type=jnp.float32, precision=precision)
    h = _gelu(h, approximate_gelu)                              # f32
    out = jnp.dot(h.astype(w_proj_ref.dtype), w_proj_ref[...],
                  preferred_element_type=jnp.float32, precision=precision)
    # Dropout(p=0) is the identity (eval semantics).
    # TODO(synk): stochastic dropout for p>0 would use pltpu.prng_seed / prng_random_bits.
    o_ref[...] = out.astype(o_ref.dtype)


def _mlp_streaming_kernel(x_ref, w_fc_ref, w_proj_ref, o_ref, acc_ref, *,
                          approximate_gelu, precision):
    # grid = (M_tiles, H_tiles); hidden dim chunked, f32 accumulator across chunks.
    h_idx = pl.program_id(1)

    @pl.when(h_idx == 0)
    def _():
        acc_ref[...] = jnp.zeros_like(acc_ref)

    h = jnp.dot(x_ref[...], w_fc_ref[...],
                preferred_element_type=jnp.float32, precision=precision)
    h = _gelu(h, approximate_gelu)
    partial = jnp.dot(h.astype(w_proj_ref.dtype), w_proj_ref[...],
                      preferred_element_type=jnp.float32, precision=precision)

    last = pl.num_programs(1) - 1

    @pl.when(h_idx < last)
    def _():
        acc_ref[...] += partial

    @pl.when(h_idx == last)
    def _():
        # Fuse the final partial into the output store: saves one full
        # (TM, E_pad) f32 VMEM read+write per row tile.
        o_ref[...] = (acc_ref[...] + partial).astype(o_ref.dtype)


# --------------------------------------------------------------------------- #
# Wrappers
# --------------------------------------------------------------------------- #
def prepare_mlp_params(w_fc, w_proj, compute_dtype=jnp.bfloat16):
    """One-time weight preparation (do OUTSIDE the hot path and reuse).

    w_fc:   (4*n_embd, n_embd)  PyTorch (out, in) layout
    w_proj: (n_embd, 4*n_embd)  PyTorch (out, in) layout

    Returns (w_fc_t, w_proj_t) in (in, out) layout, padded to multiples of 128
    along both dims and cast to the MXU compute dtype (bf16 by default).
    """
    H, E = w_fc.shape
    assert w_proj.shape == (E, H)
    E_pad = _round_up(E, _LANE)
    H_pad = _round_up(H, _LANE)
    cdt = jnp.dtype(compute_dtype)
    w_fc_t = _pad2d(w_fc.T, E_pad, H_pad).astype(cdt)       # (E_pad, H_pad)
    w_proj_t = _pad2d(w_proj.T, H_pad, E_pad).astype(cdt)   # (H_pad, E_pad)
    return w_fc_t, w_proj_t


@functools.partial(jax.jit, static_argnames=("approximate_gelu",))
def mlp_forward(x, w_fc_t, w_proj_t, approximate_gelu=False):
    """x: (..., n_embd); w_fc_t (E_pad, H_pad) / w_proj_t (H_pad, E_pad) from
    prepare_mlp_params. Returns an array of x.shape / x.dtype."""
    orig_shape = x.shape
    E = orig_shape[-1]
    E_pad, H_pad = w_fc_t.shape
    assert w_proj_t.shape == (H_pad, E_pad)
    assert E <= E_pad and E_pad % _LANE == 0 and H_pad % _LANE == 0

    out_dtype = x.dtype
    cdt = w_fc_t.dtype
    isz = jnp.dtype(cdt).itemsize
    osz = jnp.dtype(out_dtype).itemsize
    # f32 operands at DEFAULT precision run bf16 passes on the MXU; request
    # HIGHEST when the compute dtype is f32 for strict torch parity.
    precision = (jax.lax.Precision.HIGHEST if cdt == jnp.float32
                 else jax.lax.Precision.DEFAULT)

    M = math.prod(orig_shape[:-1])
    x2d = x.reshape(M, E)

    # ---- row tile: keep >= 2 blocks on the "parallel" axis when M allows
    # (feeds both v7x TensorCores); cap at 512 rows. ----
    if M >= 2048:
        TM = 512
    elif M >= 512:
        TM = 256
    elif M >= 2 * _ROW_ALIGN:
        TM = _round_up(-(-M // 2), _ROW_ALIGN)
    else:
        TM = _round_up(max(M, 1), _ROW_ALIGN)

    # ---- per-generation VMEM budget (leave headroom; matters on v7x's 64 MiB) ----
    vmem_cap = _vmem_capacity_bytes()
    usable = max(vmem_cap - 12 * 1024 * 1024, 16 * 1024 * 1024)

    weight_bytes = 2 * E_pad * H_pad * isz                 # both weights
    resident_est = (2 * weight_bytes                       # 2x-buffered weight blocks
                    + 2 * TM * E_pad * isz                 # x, double buffered
                    + 2 * TM * E_pad * osz                 # out, double buffered
                    + 2 * TM * H_pad * 4)                  # f32 intermediate + GELU temp
    use_resident = resident_est <= usable

    kernel_kwargs = dict(approximate_gelu=approximate_gelu, precision=precision)

    if use_resident:
        M_pad = _round_up(M, TM)
        x_p = _pad2d(x2d, M_pad, E_pad).astype(cdt)
        out_p = pl.pallas_call(
            functools.partial(_mlp_resident_kernel, **kernel_kwargs),
            out_shape=jax.ShapeDtypeStruct((M_pad, E_pad), out_dtype),
            grid_spec=pltpu.PrefetchScalarGridSpec(
                num_scalar_prefetch=0,
                grid=(M_pad // TM,),
                in_specs=[
                    pl.BlockSpec((TM, E_pad), lambda m: (m, 0)),      # x rows stream
                    pl.BlockSpec((E_pad, H_pad), lambda m: (0, 0)),   # c_fc: DMA'd once
                    pl.BlockSpec((H_pad, E_pad), lambda m: (0, 0)),   # c_proj: DMA'd once
                ],
                out_specs=pl.BlockSpec((TM, E_pad), lambda m: (m, 0)),
            ),
            compiler_params=pltpu.CompilerParams(
                dimension_semantics=("parallel",),
                vmem_limit_bytes=int(usable)),
        )(x_p, w_fc_t, w_proj_t)
    else:
        # Streaming fallback: weights re-streamed per row tile, so raise TM
        # (intensity ~ 2*TM/itemsize FLOP per HBM weight byte) while keeping
        # >= 2 blocks on the parallel axis, and chunk the hidden dim.
        for cand in (1024, 512):
            if M >= 2 * cand:
                TM = cand
                break
        TH = 512 if H_pad % 512 == 0 else (256 if H_pad % 256 == 0 else _LANE)
        TH = min(TH, H_pad)

        def est(tm, th):
            return (3 * 2 * E_pad * th * isz      # Buffered(3) weight chunks (both)
                    + 2 * tm * E_pad * isz        # x
                    + 2 * tm * E_pad * osz        # out
                    + tm * E_pad * 4              # f32 accumulator
                    + 2 * tm * th * 4)            # f32 intermediate + GELU temp

        while est(TM, TH) > usable and TM > 256:
            TM //= 2
        while est(TM, TH) > usable and TH > _LANE:
            TH //= 2

        M_pad = _round_up(M, TM)
        x_p = _pad2d(x2d, M_pad, E_pad).astype(cdt)
        out_p = pl.pallas_call(
            functools.partial(_mlp_streaming_kernel, **kernel_kwargs),
            out_shape=jax.ShapeDtypeStruct((M_pad, E_pad), out_dtype),
            grid_spec=pltpu.PrefetchScalarGridSpec(
                num_scalar_prefetch=0,
                grid=(M_pad // TM, H_pad // TH),
                in_specs=[
                    pl.BlockSpec((TM, E_pad), lambda m, h: (m, 0)),
                    pl.BlockSpec((E_pad, TH), lambda m, h: (0, h),
                                 pipeline_mode=pl.Buffered(3)),
                    pl.BlockSpec((TH, E_pad), lambda m, h: (h, 0),
                                 pipeline_mode=pl.Buffered(3)),
                ],
                out_specs=pl.BlockSpec((TM, E_pad), lambda m, h: (m, 0)),
                scratch_shapes=[pltpu.VMEM((TM, E_pad), jnp.float32)],
            ),
            compiler_params=pltpu.CompilerParams(
                dimension_semantics=("parallel", "arbitrary"),
                vmem_limit_bytes=int(usable)),
        )(x_p, w_fc_t, w_proj_t)

    return out_p[:M, :E].reshape(orig_shape)


def reference_mlp(x, w_fc, w_proj):
    hp = jax.lax.Precision.HIGHEST
    h = jnp.einsum("bte,he->bth", x, w_fc, precision=hp)
    h = 0.5 * h * (1.0 + jax.lax.erf(h * _SQRT_HALF))
    return jnp.einsum("bth,eh->bte", h, w_proj, precision=hp)


if __name__ == "__main__":
    # Small shapes consistent with the module: batch=2, seq=8, n_embd=32.
    B, T, n_embd = 2, 8, 32
    hidden = 4 * n_embd

    key = jax.random.PRNGKey(0)
    kx, k1, k2 = jax.random.split(key, 3)

    x = jax.random.normal(kx, (B, T, n_embd), dtype=jnp.float32)

    # Deterministic params mimicking PyTorch Linear default init, stored in
    # PyTorch (out, in) layout.
    bound_fc = 1.0 / math.sqrt(n_embd)
    bound_pr = 1.0 / math.sqrt(hidden)
    w_fc = jax.random.uniform(k1, (hidden, n_embd), jnp.float32,
                              minval=-bound_fc, maxval=bound_fc)
    w_proj = jax.random.uniform(k2, (n_embd, hidden), jnp.float32,
                                minval=-bound_pr, maxval=bound_pr)

    # --- default path: bf16 MXU operands (f32 accumulation / f32 GELU) ---
    w_fc_bf16, w_proj_bf16 = prepare_mlp_params(w_fc, w_proj)   # once, reused
    out = mlp_forward(x, w_fc_bf16, w_proj_bf16)
    jax.block_until_ready(out)
    assert out.shape == x.shape and out.dtype == x.dtype
    ref_bf16 = reference_mlp(x.astype(jnp.bfloat16).astype(jnp.float32),
                             w_fc.astype(jnp.bfloat16).astype(jnp.float32),
                             w_proj.astype(jnp.bfloat16).astype(jnp.float32))
    assert jnp.allclose(out, ref_bf16, atol=5e-2, rtol=5e-2)

    # --- strict-parity f32 path (Precision.HIGHEST operands) ---
    w_fc_f32, w_proj_f32 = prepare_mlp_params(w_fc, w_proj,
                                              compute_dtype=jnp.float32)
    out_f32 = mlp_forward(x, w_fc_f32, w_proj_f32)
    jax.block_until_ready(out_f32)
    ref = reference_mlp(x, w_fc, w_proj)
    assert jnp.allclose(out_f32, ref, atol=1e-4, rtol=1e-4)

    # --- tanh-approx GELU path (EUP) when exact torch parity isn't required ---
    out_tanh = mlp_forward(x, w_fc_bf16, w_proj_bf16, approximate_gelu=True)
    jax.block_until_ready(out_tanh)
    assert jnp.allclose(out_tanh, ref_bf16, atol=1e-1, rtol=1e-1)

    print("KERNEL_OK")
</pallas_src>

<mosaic_0001>
module attributes {stable_mosaic.version = 11 : i64} {
  func.func @_mlp_resident_kernel(%arg0: i32, %arg1: memref<16x128xbf16, #tpu.memory_space<vmem>>, %arg2: memref<128x128xbf16, #tpu.memory_space<vmem>>, %arg3: memref<128x128xbf16, #tpu.memory_space<vmem>>, %arg4: memref<16x128xf32, #tpu.memory_space<vmem>>) attributes {dimension_semantics = [#tpu.dimension_semantics<parallel>], iteration_bounds = array<i64: 1>, scalar_prefetch = 0 : i64, scratch_operands = 0 : i64, tpu.core_type = #tpu.core_type<tc>, window_params = [{transform_indices = @transform_0, window_bounds = array<i64: 16, 128>}, {pipeline_mode = #tpu.pipeline_mode<synchronous>, transform_indices = @transform_1, window_bounds = array<i64: 128, 128>}, {pipeline_mode = #tpu.pipeline_mode<synchronous>, transform_indices = @transform_2, window_bounds = array<i64: 128, 128>}, {transform_indices = @transform_3, window_bounds = array<i64: 16, 128>}]} {
    %c0 = arith.constant 0 : index
    %c0_0 = arith.constant 0 : index
    %0 = vector.load %arg1[%c0, %c0_0] : memref<16x128xbf16, #tpu.memory_space<vmem>>, vector<16x128xbf16>
    %c0_1 = arith.constant 0 : index
    %c0_2 = arith.constant 0 : index
    %1 = vector.load %arg2[%c0_1, %c0_2] : memref<128x128xbf16, #tpu.memory_space<vmem>>, vector<128x128xbf16>
    %cst = arith.constant dense<0.000000e+00> : vector<16x128xf32>
    %2 = tpu.matmul %0, %1, %cst {dimension_numbers = #tpu.dot_dimension_numbers<[1], [0], [0], [1], [0, 0, 1, 1], [], []>} : vector<16x128xbf16>, vector<128x128xbf16>, vector<16x128xf32> -> vector<16x128xf32>
    %cst_3 = arith.constant 5.000000e-01 : f32
    %3 = vector.broadcast %cst_3 : f32 to vector<16x128xf32>
    %4 = arith.mulf %3, %2 : vector<16x128xf32>
    %cst_4 = arith.constant 0.707106769 : f32
    %5 = vector.broadcast %cst_4 : f32 to vector<16x128xf32>
    %6 = arith.mulf %2, %5 : vector<16x128xf32>
    %7 = math.erf %6 : vector<16x128xf32>
    %cst_5 = arith.constant 1.000000e+00 : f32
    %8 = vector.broadcast %cst_5 : f32 to vector<16x128xf32>
    %9 = arith.addf %8, %7 : vector<16x128xf32>
    %10 = arith.mulf %4, %9 : vector<16x128xf32>
    %11 = arith.truncf %10 : vector<16x128xf32> to vector<16x128xbf16>
    %c0_6 = arith.constant 0 : index
    %c0_7 = arith.constant 0 : index
    %12 = vector.load %arg3[%c0_6, %c0_7] : memref<128x128xbf16, #tpu.memory_space<vmem>>, vector<128x128xbf16>
    %cst_8 = arith.constant dense<0.000000e+00> : vector<16x128xf32>
    %13 = tpu.matmul %11, %12, %cst_8 {dimension_numbers = #tpu.dot_dimension_numbers<[1], [0], [0], [1], [0, 0, 1, 1], [], []>} : vector<16x128xbf16>, vector<128x128xbf16>, vector<16x128xf32> -> vector<16x128xf32>
    %c0_9 = arith.constant 0 : index
    %c0_10 = arith.constant 0 : index
    %14 = vector.load %arg4[%c0_9, %c0_10] : memref<16x128xf32, #tpu.memory_space<vmem>>, vector<16x128xf32>
    tpu.vector_store %arg4[%c0_9, %c0_10], %13 {strides = array<i32>} : memref<16x128xf32, #tpu.memory_space<vmem>>, vector<16x128xf32>,
    return
  }
  func.func @transform_0(%arg0: i32) -> (i32, i32) {
    %c0_i32 = arith.constant 0 : i32
    %c0_i32_0 = arith.constant 0 : i32
    return %arg0, %c0_i32 : i32, i32
  }
  func.func @transform_1(%arg0: i32) -> (i32, i32) {
    %c0_i32 = arith.constant 0 : i32
    %c0_i32_0 = arith.constant 0 : i32
    %c0_i32_1 = arith.constant 0 : i32
    return %c0_i32, %c0_i32_0 : i32, i32
  }
  func.func @transform_2(%arg0: i32) -> (i32, i32) {
    %c0_i32 = arith.constant 0 : i32
    %c0_i32_0 = arith.constant 0 : i32
    %c0_i32_1 = arith.constant 0 : i32
    return %c0_i32, %c0_i32_0 : i32, i32
  }
  func.func @transform_3(%arg0: i32) -> (i32, i32) {
    %c0_i32 = arith.constant 0 : i32
    %c0_i32_0 = arith.constant 0 : i32
    return %arg0, %c0_i32 : i32, i32
  }
}

</mosaic_0001>

<bundles_post_ra>
// kernel: mlp_forward.1
= control target key start
LH: loop header
LB: loop body
LE: loop exit
PB: predicated region body
PF: predicated region fallthrough
CT: control target
= control target key end

     0   :  { %8 = vsyncpa [#allocation3], 0  ;;  %s489_s0 = inlined_call_operand.vmem [shape: bf16[16,128], index: 0, kind: input, shape index: {}]   ;;  %s490_s1 = inlined_call_operand.hbm [shape: bf16[128,128], index: 1, kind: input, shape index: {}]   ;;  %s491_s2 = inlined_call_operand.hbm [shape: bf16[128,128], index: 2, kind: input, shape index: {}]   ;;  %s492_s3 = inlined_call_operand.vmem [shape: f32[16,128], index: 3, kind: output, shape index: {}]  }
   0x1   :  { %9 = vsyncpa [#allocation5], 0  ;;  %s430_s12 = smov [#allocation2]   ;;  %s382_s16 = scalar_lea.hbm %s490_s1, 1024 }
   0x2   :  { %s17_s13 = sshll.u32 %s430_s12, 4  ;;  %p383_p0 = scmp.ne.s32.totalorder %s490_s1, %s382_s16  ;;  %s18_s13 = int_to_ptr.vmem [resolvable:$true] %s17_s13 }
   0x3   :  { %p386_p1 = scmp.lt.u32.totalorder %s382_s16, %s490_s1 }
   0x5   :  { %p388_p2 = pnand %p386_p1, %p383_p0 }
   0x7   :  { %391 = shalt.err (!%p388_p2)
}
   0x8   :  { %s392_s21 = scalar_lea.vmem %s18_s13, 1024  ;;  %p397_p4 = scmp.lt.s32.totalorder %s18_s13, %s18_s13 }
   0x9   :  { %p393_p3 = scmp.ne.s32.totalorder %s18_s13, %s392_s21  ;;  %p398_p5 = scmp.lt.s32.totalorder %s392_s21, %s392_s21 }
   0xb   :  { %p399_p6 = por %p398_p5, %p397_p4 }
   0xd   :  { %p400_p7 = pnand %p399_p6, %p393_p3 }
   0xf   :  { %403 = shalt.err (!%p400_p7)
}
  0x10   :  { %s431_s22 = smov 64   ;;  %s432_s23 = smov 4  }
  0x11   :  { %23 = dma.hbm_to_vmem [thread:$0]  %s490_s1, 1024, %s18_s13, [#allocation3], %s431_s22, %s431_s22, %s432_s23  }
  0x12   :  { %s433_s26 = smov [#allocation4]   ;;  %s404_s30 = scalar_lea.hbm %s491_s2, 1024 }
  0x13   :  { %s29_s27 = sshll.u32 %s433_s26, 4  ;;  %p405_p8 = scmp.ne.s32.totalorder %s491_s2, %s404_s30  ;;  %s30_s27 = int_to_ptr.vmem [resolvable:$true] %s29_s27 }
  0x14   :  { %p408_p9 = scmp.lt.u32.totalorder %s404_s30, %s491_s2 }
  0x16   :  { %p410_p10 = pnand %p408_p9, %p405_p8 }
  0x18   :  { %413 = shalt.err (!%p410_p10)
}
  0x19   :  { %s414_s8 = scalar_lea.vmem %s30_s27, 1024  ;;  %p419_p12 = scmp.lt.s32.totalorder %s30_s27, %s30_s27 }
  0x1a   :  { %p415_p11 = scmp.ne.s32.totalorder %s30_s27, %s414_s8  ;;  %p420_p13 = scmp.lt.s32.totalorder %s414_s8, %s414_s8 }
  0x1c   :  { %p421_p0 = por %p420_p13, %p419_p12 }
  0x1e   :  { %p422_p1 = pnand %p421_p0, %p415_p11 }
  0x20   :  { %425 = shalt.err (!%p422_p1)
}
  0x21   :  { %35 = dma.hbm_to_vmem [thread:$0]  %s491_s2, 1024, %s30_s27, [#allocation5], %s431_s22, %s431_s22, %s432_s23  }
  0x22   :  { %426 = dma.done.wait [#allocation3], 1024  }
  0x23   :  { %427 = vsyncadd [#allocation3], 4294966272 }
  0x24   :  { %428 = dma.done.wait [#allocation5], 1024  }
  0x25   :  { %429 = vsyncadd [#allocation5], 4294966272  ;;  %v434_v0 = vmov 0.0   ;;  %vm435_vm0 = vmmov 0   ;;  %v361_v1 = vld [vmem:[#allocation2] sm:$0xff]   ;;  %v362_v2 = vld [vmem:[#allocation2 + $0x8] sm:$0xff]  }
  0x26   :  { %315 = vmatprep.subr.bf16.mxu0 %v434_v0  ;;  %331 = vmatprep.mubr.msk.bf16.mxu0 %vm435_vm0, %v434_v0  ;;  %v363_v3 = vld [vmem:[#allocation2 + $0x10] sm:$0xff]   ;;  %v370_v4 = vld [vmem:[#allocation4] sm:$0xff]   ;;  %v364_v5 = vld [vmem:[#allocation2 + $0x18] sm:$0xff]  }
  0x27   :  { %335 = vmatprep.subr.bf16.mxu1 %v434_v0  ;;  %351 = vmatprep.mubr.msk.bf16.mxu1 %vm435_vm0, %v434_v0  ;;  %v371_v6 = vld [vmem:[#allocation4 + $0x8] sm:$0xff]   ;;  %v365_v7 = vld [vmem:[#allocation2 + $0x20] sm:$0xff]   ;;  %v372_v8 = vld [vmem:[#allocation4 + $0x10] sm:$0xff]  }
  0x28   :  { %316 = vmatpush3.bf16.msra.mxu0 %v361_v1  ;;  %336 = vmatpush3.bf16.msra.mxu1 %v370_v4  ;;  %v366_v9 = vld [vmem:[#allocation2 + $0x28] sm:$0xff]   ;;  %v367_v10 = vld [vmem:[#allocation2 + $0x30] sm:$0xff]   ;;  %v368_v11 = vld [vmem:[#allocation2 + $0x38] sm:$0xff]  }
  0x29   :  { %317 = vmatprep.subr.bf16.mxu0 %v434_v0  ;;  %337 = vmatprep.subr.bf16.mxu1 %v434_v0  ;;  %v369_v12 = vld [vmem:[%s489_s0] sm:$0xff]   ;;  %v373_v13 = vld [vmem:[#allocation4 + $0x18] sm:$0xff]   ;;  %v375_v15 = vld [vmem:[#allocation4 + $0x28] sm:$0xff]  }
  0x2a   :  { %v374_v14 = vld [vmem:[#allocation4 + $0x20] sm:$0xff]   ;;  %v376_v16 = vld [vmem:[#allocation4 + $0x30] sm:$0xff]   ;;  %v377_v17 = vld [vmem:[#allocation4 + $0x38] sm:$0xff]  }
  0x2c   :  { %318 = vmatpush3.bf16.msra.mxu0 %v362_v2  ;;  %338 = vmatpush3.bf16.msra.mxu1 %v371_v6 }
  0x2d   :  { %319 = vmatprep.subr.bf16.mxu0 %v434_v0  ;;  %339 = vmatprep.subr.bf16.mxu1 %v434_v0 }
  0x30   :  { %320 = vmatpush3.bf16.msra.mxu0 %v363_v3  ;;  %340 = vmatpush3.bf16.msra.mxu1 %v372_v8 }
  0x31   :  { %321 = vmatprep.subr.bf16.mxu0 %v434_v0  ;;  %341 = vmatprep.subr.bf16.mxu1 %v434_v0 }
  0x34   :  { %322 = vmatpush3.bf16.msra.mxu0 %v364_v5  ;;  %342 = vmatpush3.bf16.msra.mxu1 %v373_v13 }
  0x35   :  { %323 = vmatprep.subr.bf16.mxu0 %v434_v0  ;;  %343 = vmatprep.subr.bf16.mxu1 %v434_v0 }
  0x38   :  { %324 = vmatpush3.bf16.msra.mxu0 %v365_v7  ;;  %344 = vmatpush3.bf16.msra.mxu1 %v374_v14 }
  0x39   :  { %325 = vmatprep.subr.bf16.mxu0 %v434_v0  ;;  %345 = vmatprep.subr.bf16.mxu1 %v434_v0 }
  0x3c   :  { %326 = vmatpush3.bf16.msra.mxu0 %v366_v9  ;;  %346 = vmatpush3.bf16.msra.mxu1 %v375_v15 }
  0x3d   :  { %327 = vmatprep.subr.bf16.mxu0 %v434_v0  ;;  %347 = vmatprep.subr.bf16.mxu1 %v434_v0 }
  0x40   :  { %328 = vmatpush3.bf16.msra.mxu0 %v367_v10  ;;  %348 = vmatpush3.bf16.msra.mxu1 %v376_v16 }
  0x41   :  { %329 = vmatprep.subr.bf16.mxu0 %v434_v0  ;;  %349 = vmatprep.subr.bf16.mxu1 %v434_v0 }
  0x44   :  { %330 = vmatpush3.bf16.msra.mxu0 %v368_v11  ;;  %350 = vmatpush3.bf16.msra.mxu1 %v377_v17 }
  0x47   :  { %332 = vmatmul.mubr.bf16.vlgmr.msra.gmra.mrb[0].mxu0 %v369_v12 }
 0x11a   :  { %v149_v18 = vpop.f32.mrb[0].mxu0 }
 0x11b   :  { %v158_v19 = vmul.f32 0.70710677, %v149_v18  ;;  %v333_v20 = vpop.f32.mrb[1].mxu0  ;;  %v156_v27 = vmul.f32 0.5, %v149_v18 }
 0x11c   :  { %v152_v21 = vpop.f32.mrb[2].mxu0 }
 0x11d   :  { %378 = verf.f32 %v158_v19  ;;  %v159_v22 = vmul.f32 0.70710677, %v152_v21  ;;  %v334_v23 = vpop.f32.mrb[3].mxu0  ;;  %v157_v28 = vmul.f32 0.5, %v152_v21 }
 0x11f   :  { %380 = verf.f32 %v159_v22 }
 0x127   :  { %v379_v24 = vpop.eup %378 }
 0x128   :  { %v162_v25 = vadd.f32 1.0, %v379_v24 }
 0x129   :  { %v381_v26 = vpop.eup %380 }
 0x12a   :  { %v163_v29 = vadd.f32 1.0, %v381_v26  ;;  %v164_v30 = vmul.f32 %v162_v25, %v156_v27 }
 0x12c   :  { %v165_v31 = vmul.f32 %v163_v29, %v157_v28 }
 0x12e   :  { %v166_v32 = vpack.c.bf16 %v165_v31, %v164_v30 }
 0x130   :  { %352 = vmatmul.mubr.bf16.vlgmr.msra.gmra.mrb[0].mxu1 %v166_v32 }
 0x203   :  { %v265_v33 = vpop.f32.mrb[0].mxu1 }
 0x204   :  { %272 = vst [vmem:[%s492_s3] sm:$0xff] %v265_v33  ;;  %v353_v34 = vpop.f32.mrb[1].mxu1 }
 0x205   :  { %v268_v35 = vpop.f32.mrb[2].mxu1 }
 0x206   :  { %273 = vst [vmem:[%s492_s3 + $0x8] sm:$0xff] %v268_v35  ;;  %v354_v36 = vpop.f32.mrb[3].mxu1 }
 0x207   :  { %278 = vsyncpa [#allocation3], 1 }
 0x208   :  { %279 = vsyncpa [#allocation5], 1 }

</bundles_post_ra>
